<compile_context>
chip_gen: v7x
topology: tpu7x:2x2x1
jax: 0.10.0
libtpu: 0.0.40
codegen_flags: <defaults>
</compile_context>

<pallas_src>
import functools

import jax
import jax.numpy as jnp
from jax.experimental import pallas as pl
from jax.experimental.pallas import tpu as pltpu

LANE = 128
SUBLANE = 8


def _round_up(n, m):
    return ((n + m - 1) // m) * m


def nn1_kernel(x_ref, w1_ref, b1_ref, w2_ref, b2_ref, w3_ref, b3_ref, o_ref):
    cd = w1_ref.dtype  # matmul operand dtype (f32 or bf16); accumulate in f32
    x = x_ref[...].astype(cd)
    # fc1 + ReLU (bias add / relu in f32)
    h1 = jnp.dot(x, w1_ref[...], preferred_element_type=jnp.float32)
    h1 = jnp.maximum(h1 + b1_ref[...], 0.0)
    # fc2 + ReLU
    h2 = jnp.dot(h1.astype(cd), w2_ref[...], preferred_element_type=jnp.float32)
    h2 = jnp.maximum(h2 + b2_ref[...], 0.0)
    # fc3 + Tanh (f32 epilogue)
    h3 = jnp.dot(h2.astype(cd), w3_ref[...], preferred_element_type=jnp.float32)
    o_ref[...] = jnp.tanh(h3 + b3_ref[...]).astype(o_ref.dtype)


def prepare_params(w1, b1, w2, b2, w3, b3, *, compute_dtype=jnp.float32):
    """Zero-pad feature dims to multiples of 128 and cast matmul operands.

    Weights are (in, out) == torch_weight.T; biases (out,) or (1, out).
    Padding is done once here so the per-call pallas kernel sees lane-aligned,
    lane-dense arrays. Biases are kept in f32 (epilogue stays f32)."""
    def pad_w(w, in_pad, out_pad):
        w = jnp.asarray(w, jnp.float32)
        w = jnp.pad(w, ((0, in_pad - w.shape[0]), (0, out_pad - w.shape[1])))
        return w.astype(compute_dtype)

    def pad_b(b, out_pad):
        b = jnp.asarray(b, jnp.float32).reshape(1, -1)
        return jnp.pad(b, ((0, 0), (0, out_pad - b.shape[1])))

    S = w1.shape[0]                       # nb_states left unpadded (full-dim block)
    H1p = _round_up(w1.shape[1], LANE)    # 400 -> 512
    H2p = _round_up(w2.shape[1], LANE)    # 300 -> 384
    Ap = _round_up(w3.shape[1], LANE)     # 8   -> 128
    return (
        pad_w(w1, S, H1p), pad_b(b1, H1p),
        pad_w(w2, H1p, H2p), pad_b(b2, H2p),
        pad_w(w3, H2p, Ap), pad_b(b3, Ap),
    )


@functools.partial(jax.jit, static_argnames=("nb_actions",))
def nn1_forward(x, w1, b1, w2, b2, w3, b3, *, nb_actions):
    """x: (B, nb_states) f32; padded params from prepare_params.
    Returns (B, nb_actions) f32."""
    B, S = x.shape
    H1, H2, A = w1.shape[1], w2.shape[1], w3.shape[1]

    # Batch tile: big enough to amortize per-step overhead, lean for tiny batches.
    TM = min(512, _round_up(B, SUBLANE))
    B_pad = _round_up(B, TM)
    if B_pad != B:
        x = jnp.pad(x, ((0, B_pad - B), (0, 0)))

    def resident(shape):
        # Same block index every grid step -> stays pinned in VMEM.
        return pl.BlockSpec(shape, lambda i: (0, 0))

    grid_m = B_pad // TM
    flops = 2 * B_pad * (S * H1 + H1 * H2 + H2 * A)
    bytes_accessed = 4 * (
        B_pad * S + B_pad * A
        + S * H1 + H1 + H1 * H2 + H2 + H2 * A + A
    )

    out_padded = pl.pallas_call(
        nn1_kernel,
        out_shape=jax.ShapeDtypeStruct((B_pad, A), jnp.float32),
        grid=(grid_m,),
        in_specs=[
            pl.BlockSpec((TM, S), lambda i: (i, 0)),   # x tile, pipelined
            resident((S, H1)), resident((1, H1)),
            resident((H1, H2)), resident((1, H2)),
            resident((H2, A)), resident((1, A)),
        ],
        out_specs=pl.BlockSpec((TM, A), lambda i: (i, 0)),
        compiler_params=pltpu.CompilerParams(
            dimension_semantics=("parallel",),
            vmem_limit_bytes=64 << 20,
        ),
        cost_estimate=pl.CostEstimate(
            flops=flops,
            transcendentals=B_pad * A,
            bytes_accessed=bytes_accessed,
        ),
    )(x, w1, b1, w2, b2, w3, b3)

    return out_padded[:B, :nb_actions]


def init_params(key, nb_states, nb_actions, hidden1=400, hidden2=300):
    """nn.Linear-style uniform(+-1/sqrt(fan_in)) init; weights stored as (in, out)."""
    ks = jax.random.split(key, 6)

    def linear(kw, kb, fan_in, fan_out):
        bound = 1.0 / jnp.sqrt(jnp.float32(fan_in))
        w = jax.random.uniform(kw, (fan_in, fan_out), jnp.float32, -bound, bound)
        b = jax.random.uniform(kb, (1, fan_out), jnp.float32, -bound, bound)
        return w, b

    w1, b1 = linear(ks[0], ks[1], nb_states, hidden1)
    w2, b2 = linear(ks[2], ks[3], hidden1, hidden2)
    w3, b3 = linear(ks[4], ks[5], hidden2, nb_actions)
    return w1, b1, w2, b2, w3, b3


def _reference(x, params):
    w1, b1, w2, b2, w3, b3 = params
    h = jnp.maximum(x @ w1 + b1, 0.0)
    h = jnp.maximum(h @ w2 + b2, 0.0)
    return jnp.tanh(h @ w3 + b3)


if __name__ == "__main__":
    key = jax.random.PRNGKey(0)
    k_x, k_x2, k_p = jax.random.split(key, 3)

    batch = 4
    nb_states = 16
    nb_actions = 8
    hidden1, hidden2 = 400, 300  # module defaults

    params = init_params(k_p, nb_states, nb_actions, hidden1, hidden2)

    # --- f32 path (exact match to reference) ---
    params_f32 = prepare_params(*params, compute_dtype=jnp.float32)

    x_small = jax.random.normal(k_x, (batch, nb_states), dtype=jnp.float32)
    out = nn1_forward(x_small, *params_f32, nb_actions=nb_actions)
    jax.block_until_ready(out)
    ref = _reference(x_small, params)
    assert out.shape == (batch, nb_actions)
    assert jnp.allclose(out, ref, atol=1e-5, rtol=1e-5)

    # Larger, non-aligned batch to exercise the grid + batch padding/slicing.
    x_big = jax.random.normal(k_x2, (300, nb_states), dtype=jnp.float32)
    out_big = nn1_forward(x_big, *params_f32, nb_actions=nb_actions)
    jax.block_until_ready(out_big)
    ref_big = _reference(x_big, params)
    assert out_big.shape == (300, nb_actions)
    assert jnp.allclose(out_big, ref_big, atol=1e-5, rtol=1e-5)

    # --- bf16 matmul operands (v6e/v7x fast path), f32 accumulate + epilogue ---
    params_bf16 = prepare_params(*params, compute_dtype=jnp.bfloat16)
    out_bf16 = nn1_forward(x_big, *params_bf16, nb_actions=nb_actions)
    jax.block_until_ready(out_bf16)
    assert jnp.allclose(out_bf16, ref_big, atol=5e-2, rtol=5e-2)

    print("KERNEL_OK")
</pallas_src>

<mosaic_0001>
module attributes {stable_mosaic.version = 11 : i64} {
  func.func @nn1_kernel(%arg0: i32, %arg1: memref<8x16xf32, #tpu.memory_space<vmem>>, %arg2: memref<16x512xf32, #tpu.memory_space<vmem>>, %arg3: memref<1x512xf32, #tpu.memory_space<vmem>>, %arg4: memref<512x384xf32, #tpu.memory_space<vmem>>, %arg5: memref<1x384xf32, #tpu.memory_space<vmem>>, %arg6: memref<384x128xf32, #tpu.memory_space<vmem>>, %arg7: memref<1x128xf32, #tpu.memory_space<vmem>>, %arg8: memref<8x128xf32, #tpu.memory_space<vmem>>) attributes {dimension_semantics = [#tpu.dimension_semantics<parallel>], iteration_bounds = array<i64: 1>, scalar_prefetch = 0 : i64, scratch_operands = 0 : i64, tpu.core_type = #tpu.core_type<tc>, window_params = [{transform_indices = @transform_0, window_bounds = array<i64: 8, 16>}, {pipeline_mode = #tpu.pipeline_mode<synchronous>, transform_indices = @transform_1, window_bounds = array<i64: 16, 512>}, {pipeline_mode = #tpu.pipeline_mode<synchronous>, transform_indices = @transform_2, window_bounds = array<i64: 1, 512>}, {pipeline_mode = #tpu.pipeline_mode<synchronous>, transform_indices = @transform_3, window_bounds = array<i64: 512, 384>}, {pipeline_mode = #tpu.pipeline_mode<synchronous>, transform_indices = @transform_4, window_bounds = array<i64: 1, 384>}, {pipeline_mode = #tpu.pipeline_mode<synchronous>, transform_indices = @transform_5, window_bounds = array<i64: 384, 128>}, {pipeline_mode = #tpu.pipeline_mode<synchronous>, transform_indices = @transform_6, window_bounds = array<i64: 1, 128>}, {transform_indices = @transform_7, window_bounds = array<i64: 8, 128>}]} {
    %c0 = arith.constant 0 : index
    %c0_0 = arith.constant 0 : index
    %0 = vector.load %arg1[%c0, %c0_0] : memref<8x16xf32, #tpu.memory_space<vmem>>, vector<8x16xf32>
    %c0_1 = arith.constant 0 : index
    %c0_2 = arith.constant 0 : index
    %1 = vector.load %arg2[%c0_1, %c0_2] : memref<16x512xf32, #tpu.memory_space<vmem>>, vector<16x512xf32>
    %cst = arith.constant dense<0.000000e+00> : vector<8x512xf32>
    %2 = tpu.matmul %0, %1, %cst {dimension_numbers = #tpu.dot_dimension_numbers<[1], [0], [0], [1], [0, 0, 1, 1], [], []>} : vector<8x16xf32>, vector<16x512xf32>, vector<8x512xf32> -> vector<8x512xf32>
    %c0_3 = arith.constant 0 : index
    %c0_4 = arith.constant 0 : index
    %3 = vector.load %arg3[%c0_3, %c0_4] : memref<1x512xf32, #tpu.memory_space<vmem>>, vector<1x512xf32>
    %4 = vector.broadcast %3 : vector<1x512xf32> to vector<8x512xf32>
    %5 = arith.addf %2, %4 : vector<8x512xf32>
    %cst_5 = arith.constant 0.000000e+00 : f32
    %6 = vector.broadcast %cst_5 : f32 to vector<8x512xf32>
    %7 = arith.maximumf %5, %6 : vector<8x512xf32>
    %c0_6 = arith.constant 0 : index
    %c0_7 = arith.constant 0 : index
    %8 = vector.load %arg4[%c0_6, %c0_7] : memref<512x384xf32, #tpu.memory_space<vmem>>, vector<512x384xf32>
    %cst_8 = arith.constant dense<0.000000e+00> : vector<8x384xf32>
    %9 = tpu.matmul %7, %8, %cst_8 {dimension_numbers = #tpu.dot_dimension_numbers<[1], [0], [0], [1], [0, 0, 1, 1], [], []>} : vector<8x512xf32>, vector<512x384xf32>, vector<8x384xf32> -> vector<8x384xf32>
    %c0_9 = arith.constant 0 : index
    %c0_10 = arith.constant 0 : index
    %10 = vector.load %arg5[%c0_9, %c0_10] : memref<1x384xf32, #tpu.memory_space<vmem>>, vector<1x384xf32>
    %11 = vector.broadcast %10 : vector<1x384xf32> to vector<8x384xf32>
    %12 = arith.addf %9, %11 : vector<8x384xf32>
    %cst_11 = arith.constant 0.000000e+00 : f32
    %13 = vector.broadcast %cst_11 : f32 to vector<8x384xf32>
    %14 = arith.maximumf %12, %13 : vector<8x384xf32>
    %c0_12 = arith.constant 0 : index
    %c0_13 = arith.constant 0 : index
    %15 = vector.load %arg6[%c0_12, %c0_13] : memref<384x128xf32, #tpu.memory_space<vmem>>, vector<384x128xf32>
    %cst_14 = arith.constant dense<0.000000e+00> : vector<8x128xf32>
    %16 = tpu.matmul %14, %15, %cst_14 {dimension_numbers = #tpu.dot_dimension_numbers<[1], [0], [0], [1], [0, 0, 1, 1], [], []>} : vector<8x384xf32>, vector<384x128xf32>, vector<8x128xf32> -> vector<8x128xf32>
    %c0_15 = arith.constant 0 : index
    %c0_16 = arith.constant 0 : index
    %17 = vector.load %arg7[%c0_15, %c0_16] : memref<1x128xf32, #tpu.memory_space<vmem>>, vector<1x128xf32>
    %18 = vector.broadcast %17 : vector<1x128xf32> to vector<8x128xf32>
    %19 = arith.addf %16, %18 : vector<8x128xf32>
    %20 = math.tanh %19 : vector<8x128xf32>
    %c0_17 = arith.constant 0 : index
    %c0_18 = arith.constant 0 : index
    %21 = vector.load %arg8[%c0_17, %c0_18] : memref<8x128xf32, #tpu.memory_space<vmem>>, vector<8x128xf32>
    tpu.vector_store %arg8[%c0_17, %c0_18], %20 {strides = array<i32>} : memref<8x128xf32, #tpu.memory_space<vmem>>, vector<8x128xf32>,
    return
  }
  func.func @transform_0(%arg0: i32) -> (i32, i32) {
    %c0_i32 = arith.constant 0 : i32
    %c0_i32_0 = arith.constant 0 : i32
    return %arg0, %c0_i32 : i32, i32
  }
  func.func @transform_1(%arg0: i32) -> (i32, i32) {
    %c0_i32 = arith.constant 0 : i32
    %c0_i32_0 = arith.constant 0 : i32
    %c0_i32_1 = arith.constant 0 : i32
    return %c0_i32, %c0_i32_0 : i32, i32
  }
  func.func @transform_2(%arg0: i32) -> (i32, i32) {
    %c0_i32 = arith.constant 0 : i32
    %c0_i32_0 = arith.constant 0 : i32
    %c0_i32_1 = arith.constant 0 : i32
    return %c0_i32, %c0_i32_0 : i32, i32
  }
  func.func @transform_3(%arg0: i32) -> (i32, i32) {
    %c0_i32 = arith.constant 0 : i32
    %c0_i32_0 = arith.constant 0 : i32
    %c0_i32_1 = arith.constant 0 : i32
    return %c0_i32, %c0_i32_0 : i32, i32
  }
  func.func @transform_4(%arg0: i32) -> (i32, i32) {
    %c0_i32 = arith.constant 0 : i32
    %c0_i32_0 = arith.constant 0 : i32
    %c0_i32_1 = arith.constant 0 : i32
    return %c0_i32, %c0_i32_0 : i32, i32
  }
  func.func @transform_5(%arg0: i32) -> (i32, i32) {
    %c0_i32 = arith.constant 0 : i32
    %c0_i32_0 = arith.constant 0 : i32
    %c0_i32_1 = arith.constant 0 : i32
    return %c0_i32, %c0_i32_0 : i32, i32
  }
  func.func @transform_6(%arg0: i32) -> (i32, i32) {
    %c0_i32 = arith.constant 0 : i32
    %c0_i32_0 = arith.constant 0 : i32
    %c0_i32_1 = arith.constant 0 : i32
    return %c0_i32, %c0_i32_0 : i32, i32
  }
  func.func @transform_7(%arg0: i32) -> (i32, i32) {
    %c0_i32 = arith.constant 0 : i32
    %c0_i32_0 = arith.constant 0 : i32
    return %arg0, %c0_i32 : i32, i32
  }
}

</mosaic_0001>

<bundles_post_ra>
// kernel: nn1_forward.1
= control target key start
LH: loop header
LB: loop body
LE: loop exit
PB: predicated region body
PF: predicated region fallthrough
CT: control target
= control target key end

     0   :  { %12 = vsyncpa [#allocation3], 0  ;;  %s1817_s0 = inlined_call_operand.hbm [shape: f32[8,16], index: 0, kind: input, shape index: {}]   ;;  %s1818_s1 = inlined_call_operand.hbm [shape: f32[16,512], index: 1, kind: input, shape index: {}]   ;;  %s1819_s2 = inlined_call_operand.hbm [shape: f32[1,512], index: 2, kind: input, shape index: {}]   ;;  %s1820_s3 = inlined_call_operand.hbm [shape: f32[512,384], index: 3, kind: input, shape index: {}]   ;;  %s1821_s4 = inlined_call_operand.hbm [shape: f32[1,384], index: 4, kind: input, shape index: {}]   ;;  %s1822_s5 = inlined_call_operand.hbm [shape: f32[384,128], index: 5, kind: input, shape index: {}]   ;;  %s1823_s6 = inlined_call_operand.hbm [shape: f32[1,128], index: 6, kind: input, shape index: {}]   ;;  %s1824_s7 = inlined_call_operand.hbm [shape: f32[8,128], index: 7, kind: output, shape index: {}]  }
   0x1   :  { %13 = vsyncpa [#allocation6], 0 }
   0x2   :  { %14 = vsyncpa [#allocation9], 0 }
   0x3   :  { %15 = vsyncpa [#allocation12], 0 }
   0x4   :  { %16 = vsyncpa [#allocation4], 0  ;;  %s1629_s24 = smov [#allocation5]   ;;  %s1443_s28 = scalar_lea.hbm %s1818_s1, 1024 }
   0x5   :  { %s32_s25 = sshll.u32 %s1629_s24, 4  ;;  %p1444_p0 = scmp.ne.s32.totalorder %s1818_s1, %s1443_s28  ;;  %s33_s25 = int_to_ptr.vmem [resolvable:$true] %s32_s25 }
   0x6   :  { %p1447_p1 = scmp.lt.u32.totalorder %s1443_s28, %s1818_s1 }
   0x8   :  { %p1449_p2 = pnand %p1447_p1, %p1444_p0 }
   0xa   :  { %1452 = shalt.err (!%p1449_p2)
}
   0xb   :  { %s1453_s10 = scalar_lea.vmem %s33_s25, 1024  ;;  %p1458_p4 = scmp.lt.s32.totalorder %s33_s25, %s33_s25 }
   0xc   :  { %p1454_p3 = scmp.ne.s32.totalorder %s33_s25, %s1453_s10  ;;  %p1459_p5 = scmp.lt.s32.totalorder %s1453_s10, %s1453_s10 }
   0xe   :  { %p1460_p6 = por %p1459_p5, %p1458_p4 }
  0x10   :  { %p1461_p7 = pnand %p1460_p6, %p1454_p3 }
  0x12   :  { %1464 = shalt.err (!%p1461_p7)
}
  0x13   :  { %s1630_s11 = smov 512   ;;  %s1631_s12 = smov 32  }
  0x14   :  { %38 = dma.hbm_to_vmem [thread:$0]  %s1818_s1, 1024, %s33_s25, [#allocation6], %s1630_s11, %s1630_s11, %s1631_s12  }
  0x15   :  { %s1632_s15 = smov [#allocation8]   ;;  %s1465_s19 = scalar_lea.hbm %s1820_s3, 24576 }
  0x16   :  { %s54_s16 = sshll.u32 %s1632_s15, 4  ;;  %p1466_p8 = scmp.ne.s32.totalorder %s1820_s3, %s1465_s19  ;;  %s55_s16 = int_to_ptr.vmem [resolvable:$true] %s54_s16 }
  0x17   :  { %p1469_p9 = scmp.lt.u32.totalorder %s1465_s19, %s1820_s3 }
  0x19   :  { %p1471_p10 = pnand %p1469_p9, %p1466_p8 }
  0x1b   :  { %1474 = shalt.err (!%p1471_p10)
}
  0x1c   :  { %s1475_s24 = scalar_lea.vmem %s55_s16, 24576  ;;  %p1480_p12 = scmp.lt.s32.totalorder %s55_s16, %s55_s16 }
  0x1d   :  { %p1476_p11 = scmp.ne.s32.totalorder %s55_s16, %s1475_s24  ;;  %p1481_p13 = scmp.lt.s32.totalorder %s1475_s24, %s1475_s24 }
  0x1f   :  { %p1482_p0 = por %p1481_p13, %p1480_p12 }
  0x21   :  { %p1483_p1 = pnand %p1482_p0, %p1476_p11 }
  0x23   :  { %1486 = shalt.err (!%p1483_p1)
}
  0x24   :  { %s1633_s1 = smov 384   ;;  %s1634_s25 = smov 24  }
  0x25   :  { %60 = dma.hbm_to_vmem [thread:$0]  %s1820_s3, 24576, %s55_s16, [#allocation9], %s1633_s1, %s1633_s1, %s1634_s25  }
  0x26   :  { %s1635_s28 = smov [#allocation11]   ;;  %s1487_s9 = scalar_lea.hbm %s1822_s5, 6144 }
  0x27   :  { %s76_s29 = sshll.u32 %s1635_s28, 4  ;;  %p1488_p2 = scmp.ne.s32.totalorder %s1822_s5, %s1487_s9  ;;  %s77_s29 = int_to_ptr.vmem [resolvable:$true] %s76_s29 }
  0x28   :  { %p1491_p3 = scmp.lt.u32.totalorder %s1487_s9, %s1822_s5 }
  0x2a   :  { %p1493_p4 = pnand %p1491_p3, %p1488_p2 }
  0x2c   :  { %1496 = shalt.err (!%p1493_p4)
}
  0x2d   :  { %s1497_s14 = scalar_lea.vmem %s77_s29, 6144  ;;  %p1502_p6 = scmp.lt.s32.totalorder %s77_s29, %s77_s29 }
  0x2e   :  { %p1498_p5 = scmp.ne.s32.totalorder %s77_s29, %s1497_s14  ;;  %p1503_p7 = scmp.lt.s32.totalorder %s1497_s14, %s1497_s14 }
  0x30   :  { %p1504_p8 = por %p1503_p7, %p1502_p6 }
  0x32   :  { %p1505_p9 = pnand %p1504_p8, %p1498_p5 }
  0x34   :  { %1508 = shalt.err (!%p1505_p9)
}
  0x35   :  { %s1636_s3 = smov 128   ;;  %s1637_s15 = smov 8  }
  0x36   :  { %82 = dma.hbm_to_vmem [thread:$0]  %s1822_s5, 6144, %s77_s29, [#allocation12], %s1636_s3, %s1636_s3, %s1637_s15  }
  0x37   :  { %s1638_s18 = smov [#allocation2]   ;;  %s1639_s20 = smov [#allocation7]  }
  0x38   :  { %s23_s19 = sshll.u32 %s1638_s18, 4  ;;  %s45_s21 = sshll.u32 %s1639_s20, 4  ;;  %s24_s19 = int_to_ptr.vmem [resolvable:$true] %s23_s19  ;;  %s46_s21 = int_to_ptr.vmem [resolvable:$true] %s45_s21 }
  0x39   :  { %s1509_s24 = scalar_lea.hbm %s1817_s0, 128 }
  0x3a   :  { %p1510_p10 = scmp.ne.s32.totalorder %s1817_s0, %s1509_s24  ;;  %p1513_p11 = scmp.lt.u32.totalorder %s1509_s24, %s1817_s0 }
  0x3c   :  { %p1515_p12 = pnand %p1513_p11, %p1510_p10 }
  0x3e   :  { %1518 = shalt.err (!%p1515_p12)
}
  0x3f   :  { %s1519_s5 = scalar_lea.vmem %s24_s19, 128  ;;  %p1524_p0 = scmp.lt.s32.totalorder %s24_s19, %s24_s19 }
  0x40   :  { %p1520_p13 = scmp.ne.s32.totalorder %s24_s19, %s1519_s5  ;;  %p1525_p1 = scmp.lt.s32.totalorder %s1519_s5, %s1519_s5 }
  0x42   :  { %p1526_p2 = por %p1525_p1, %p1524_p0 }
  0x44   :  { %p1527_p3 = pnand %p1526_p2, %p1520_p13 }
  0x46   :  { %1530 = shalt.err (!%p1527_p3)
}
  0x47   :  { %26 = dma.hbm_to_vmem [thread:$0]  %s1817_s0, 128, %s24_s19, [#allocation3]  }
  0x48   :  { %s1531_s9 = scalar_lea.hbm %s1819_s2, 64 }
  0x49   :  { %p1532_p4 = scmp.ne.s32.totalorder %s1819_s2, %s1531_s9  ;;  %p1535_p5 = scmp.lt.u32.totalorder %s1531_s9, %s1819_s2 }
  0x4b   :  { %p1537_p6 = pnand %p1535_p5, %p1532_p4 }
  0x4d   :  { %1540 = shalt.err (!%p1537_p6)
}
  0x4e   :  { %s1541_s14 = scalar_lea.vmem %s46_s21, 64  ;;  %p1546_p8 = scmp.lt.s32.totalorder %s46_s21, %s46_s21 }
  0x4f   :  { %p1542_p7 = scmp.ne.s32.totalorder %s46_s21, %s1541_s14  ;;  %p1547_p9 = scmp.lt.s32.totalorder %s1541_s14, %s1541_s14 }
  0x51   :  { %p1548_p10 = por %p1547_p9, %p1546_p8 }
  0x53   :  { %p1549_p11 = pnand %p1548_p10, %p1542_p7 }
  0x55   :  { %1552 = shalt.err (!%p1549_p11)
}
  0x56   :  { %48 = dma.hbm_to_vmem [thread:$0]  %s1819_s2, 64, %s46_s21, [#allocation6]  }
  0x57   :  { %s1640_s15 = smov [#allocation10]   ;;  %s1641_s17 = smov [#allocation13]  }
  0x58   :  { %s67_s16 = sshll.u32 %s1640_s15, 4  ;;  %s89_s18 = sshll.u32 %s1641_s17, 4  ;;  %s68_s16 = int_to_ptr.vmem [resolvable:$true] %s67_s16  ;;  %s90_s18 = int_to_ptr.vmem [resolvable:$true] %s89_s18 }
  0x59   :  { %s1553_s22 = scalar_lea.hbm %s1821_s4, 48 }
  0x5a   :  { %p1554_p12 = scmp.ne.s32.totalorder %s1821_s4, %s1553_s22  ;;  %p1557_p13 = scmp.lt.u32.totalorder %s1553_s22, %s1821_s4 }
  0x5c   :  { %p1559_p0 = pnand %p1557_p13, %p1554_p12 }
  0x5e   :  { %1562 = shalt.err (!%p1559_p0)
}
  0x5f   :  { %s1563_s2 = scalar_lea.vmem %s68_s16, 48  ;;  %s1567_s21 = scalar_lea.vmem %s68_s16, 64 }
  0x60   :  { %p1564_p1 = scmp.ne.s32.totalorder %s68_s16, %s1563_s2  ;;  %p1568_p2 = scmp.lt.s32.totalorder %s68_s16, %s68_s16 }
  0x61   :  { %p1569_p3 = scmp.lt.s32.totalorder %s1567_s21, %s1563_s2 }
  0x63   :  { %p1570_p4 = por %p1569_p3, %p1568_p2 }
  0x65   :  { %p1571_p5 = pnand %p1570_p4, %p1564_p1 }
  0x67   :  { %1574 = shalt.err (!%p1571_p5)
}
  0x68   :  { %70 = dma.hbm_to_vmem [thread:$0]  %s1821_s4, 48, %s68_s16, [#allocation9]  }
  0x69   :  { %s1575_s29 = scalar_lea.hbm %s1823_s6, 16 }
  0x6a   :  { %p1576_p6 = scmp.ne.s32.totalorder %s1823_s6, %s1575_s29  ;;  %p1579_p7 = scmp.lt.u32.totalorder %s1575_s29, %s1823_s6 }
  0x6c   :  { %p1581_p8 = pnand %p1579_p7, %p1576_p6 }
  0x6e   :  { %1584 = shalt.err (!%p1581_p8)
}
  0x6f   :  { %s1585_s11 = scalar_lea.vmem %s90_s18, 16  ;;  %s1589_s12 = scalar_lea.vmem %s90_s18, 32 }
  0x70   :  { %p1586_p9 = scmp.ne.s32.totalorder %s90_s18, %s1585_s11  ;;  %p1590_p10 = scmp.lt.s32.totalorder %s90_s18, %s90_s18 }
  0x71   :  { %p1591_p11 = scmp.lt.s32.totalorder %s1589_s12, %s1585_s11 }
  0x73   :  { %p1592_p12 = por %p1591_p11, %p1590_p10 }
  0x75   :  { %p1593_p13 = pnand %p1592_p12, %p1586_p9 }
  0x77   :  { %1596 = shalt.err (!%p1593_p13)
}
  0x78   :  { %92 = dma.hbm_to_vmem [thread:$0]  %s1823_s6, 16, %s90_s18, [#allocation12]  }
  0x79   :  { %1619 = dma.done.wait [#allocation3], 128  }
  0x7a   :  { %1620 = vsyncadd [#allocation3], 4294967168 }
  0x7b   :  { %1621 = dma.done.wait [#allocation6], 1088  }
  0x7c   :  { %1622 = vsyncadd [#allocation6], 4294966208 }
  0x7d   :  { %1623 = dma.done.wait [#allocation9], 24624  }
  0x7e   :  { %1624 = vsyncadd [#allocation9], 4294942672 }
  0x7f   :  { %1625 = dma.done.wait [#allocation12], 6160  }
  0x80   :  { %1626 = vsyncadd [#allocation12], 4294961136  ;;  %v1642_v0 = vmov 0.0   ;;  %v116_v1 = vld [vmem:[#allocation5 + $0x8] sm:$0xff]  ;;  %v115_v3 = vld [vmem:[#allocation5] sm:$0xff]  ;;  %vm145_vm0 = vcmask 130048  }
  0x81   :  { %213 = vmatprep.mubr.f32.mxu0 %v1642_v0  ;;  %284 = vmatprep.mubr.f32.mxu1 %v1642_v0  ;;  %v120_v2 = vld [vmem:[#allocation5 + $0x28] sm:$0xff]  ;;  %v119_v5 = vld [vmem:[#allocation5 + $0x20] sm:$0xff]  ;;  %v118_v6 = vld [vmem:[#allocation5 + $0x18] sm:$0xff]  ;;  %vm1644_vm1 = vmmov 0   ;;  %s1645_s6 = smov [#allocation14]  }
  0x82   :  { %v1164_v4 = vpack.c.bf16 %v120_v2, %v116_v1  ;;  %v1166_v7 = vpack.c.bf16 %v119_v5, %v115_v3  ;;  %v114_v8 = vld [vmem:[#allocation2] sm:$0xff]  ;;  %v117_v10 = vld [vmem:[#allocation5 + $0x10] sm:$0xff]  ;;  %v299_v15 = vld [vmem:[#allocation8 + $0x20] sm:$0xff]  ;;  %s992_s14 = sshll.u32 %s1645_s6, 4  ;;  %s993_s14 = int_to_ptr.vmem [resolvable:$true] %s992_s14 }
  0x83   :  { %v122_v9 = vld [vmem:[#allocation5 + $0x38] sm:$0xff]  ;;  %v121_v11 = vld [vmem:[#allocation5 + $0x30] sm:$0xff]  ;;  %v295_v16 = vld [vmem:[#allocation8] sm:$0xff]  ;;  %s1597_s0 = scalar_lea.vmem %s993_s14, 128  ;;  %p1602_p1 = scmp.lt.s32.totalorder %s993_s14, %s993_s14 }
  0x84   :  { %1165 = vmatprep.subr.bf16.mxu0 %v1164_v4  ;;  %v1168_v12 = vpack.c.bf16 %v122_v9, %v118_v6  ;;  %v1170_v13 = vpack.c.bf16 %v121_v11, %v117_v10  ;;  %v296_v14 = vld [vmem:[#allocation8 + $0x8] sm:$0xff]  ;;  %v298_v18 = vld [vmem:[#allocation8 + $0x18] sm:$0xff]  ;;  %v305_v20 = vld [vmem:[#allocation8 + $0x50] sm:$0xff]  ;;  %p1598_p0 = scmp.ne.s32.totalorder %s993_s14, %s1597_s0  ;;  %p1603_p2 = scmp.lt.s32.totalorder %s1597_s0, %s1597_s0 }
  0x85   :  { %1167 = vmatpush1.bf16.msra.mxu0 %v1166_v7  ;;  %v1172_v17 = vpack.c.bf16 %v299_v15, %v296_v14  ;;  %v302_v19 = vld [vmem:[#allocation8 + $0x38] sm:$0xff]  ;;  %v1174_v21 = vpack.c.bf16 %v298_v18, %v295_v16  ;;  %v301_v23 = vld [vmem:[#allocation8 + $0x30] sm:$0xff]  ;;  %v304_v24 = vld [vmem:[#allocation8 + $0x48] sm:$0xff] }
  0x86   :  { %1169 = vmatprep.subr.bf16.mxu1 %v1168_v12  ;;  %v1176_v22 = vpack.c.bf16 %v305_v20, %v302_v19  ;;  %v308_v25 = vld [vmem:[#allocation8 + $0x68] sm:$0xff]  ;;  %v311_v26 = vld [vmem:[#allocation8 + $0x80] sm:$0xff]  ;;  %v1178_v27 = vpack.c.bf16 %v304_v24, %v301_v23  ;;  %v310_v30 = vld [vmem:[#allocation8 + $0x78] sm:$0xff]  ;;  %p1604_p3 = por %p1603_p2, %p1602_p1 }
  0x87   :  { %1171 = vmatpush1.bf16.msra.mxu1 %v1170_v13  ;;  %1173 = vmatprep.subr.bf16.mxu0 %v1172_v17  ;;  %v1180_v28 = vpack.c.bf16 %v311_v26, %v308_v25  ;;  %v307_v29 = vld [vmem:[#allocation8 + $0x60] sm:$0xff]  ;;  %v314_v31 = vld [vmem:[#allocation8 + $0x98] sm:$0xff]  ;;  %v317_v32 = vld [vmem:[#allocation8 + $0xb0] sm:$0xff] }
  0x88   :  { %1004 = vmatmul.mubr.msk.f32.vlgmr.msra.gmra.mrb[0].mxu0 %vm145_vm0, %v114_v8  ;;  %v1182_v33 = vpack.c.bf16 %v310_v30, %v307_v29  ;;  %v1184_v34 = vpack.c.bf16 %v317_v32, %v314_v31  ;;  %v313_v35 = vld [vmem:[#allocation8 + $0x90] sm:$0xff]  ;;  %v316_v36 = vld [vmem:[#allocation8 + $0xa8] sm:$0xff]  ;;  %v323_v38 = vld [vmem:[#allocation8 + $0xe0] sm:$0xff]  ;;  %p1605_p4 = pnand %p1604_p3, %p1598_p0 }
  0x89   :  { %1175 = vmatpush1.bf16.msra.mxu0 %v1174_v21  ;;  %v320_v37 = vld [vmem:[#allocation8 + $0xc8] sm:$0xff]  ;;  %v345_v39 = vld [vmem:[#allocation8 + $0x190] sm:$0xff]  ;;  %v1186_v43 = vpack.c.bf16 %v316_v36, %v313_v35  ;;  %v319_v44 = vld [vmem:[#allocation8 + $0xc0] sm:$0xff] }
  0x8a   :  { %1005 = vmatmul.mubr.msk.f32.vlgmr.msra.gmra.mrb[0].mxu1 %vm145_vm0, %v114_v8  ;;  %1177 = vmatprep.subr.bf16.mxu0 %v1176_v22  ;;  %v348_v40 = vld [vmem:[#allocation8 + $0x1a8] sm:$0xff]  ;;  %v297_v42 = vld [vmem:[#allocation8 + $0x10] sm:$0xff]  ;;  %v322_v45 = vld [vmem:[#allocation8 + $0xd8] sm:$0xff]  ;;  %v1188_v47 = vpack.c.bf16 %v323_v38, %v320_v37 }
  0x8b   :  { %v1300_v41 = vpack.c.bf16 %v348_v40, %v345_v39  ;;  %v300_v46 = vld [vmem:[#allocation8 + $0x28] sm:$0xff]  ;;  %v326_v48 = vld [vmem:[#allocation8 + $0xf8] sm:$0xff]  ;;  %v351_v50 = vld [vmem:[#allocation8 + $0x1c0] sm:$0xff]  ;;  %v1190_v58 = vpack.c.bf16 %v322_v45, %v319_v44 }
  0x8c   :  { %v1302_v49 = vpack.c.bf16 %v300_v46, %v297_v42  ;;  %v354_v51 = vld [vmem:[#allocation8 + $0x1d8] sm:$0xff]  ;;  %v329_v52 = vld [vmem:[#allocation8 + $0x110] sm:$0xff]  ;;  %v303_v54 = vld [vmem:[#allocation8 + $0x40] sm:$0xff] }
  0x8d   :  { %1179 = vmatpush1.bf16.msra.mxu0 %v1178_v27  ;;  %1301 = vmatprep.subr.bf16.mxu1 %v1300_v41  ;;  %v1304_v53 = vpack.c.bf16 %v354_v51, %v351_v50  ;;  %v306_v55 = vld [vmem:[#allocation8 + $0x58] sm:$0xff]  ;;  %v357_v57 = vld [vmem:[#allocation8 + $0x1f0] sm:$0xff]  ;;  %v328_v60 = vld [vmem:[#allocation8 + $0x108] sm:$0xff]  ;;  %v1192_v62 = vpack.c.bf16 %v329_v52, %v326_v48 }
  0x8e   :  { %1181 = vmatprep.subr.bf16.mxu0 %v1180_v28  ;;  %1303 = vmatpush3.bf16.msra.mxu1 %v1302_v49  ;;  %v1306_v56 = vpack.c.bf16 %v306_v55, %v303_v54  ;;  %v325_v59 = vld [vmem:[#allocation8 + $0xf0] sm:$0xff]  ;;  %v360_v61 = vld [vmem:[#allocation8 + $0x208] sm:$0xff]  ;;  %v335_v4 = vld [vmem:[#allocation8 + $0x140] sm:$0xff] }
  0x8f   :  { %1305 = vmatprep.subr.bf16.mxu1 %v1304_v53  ;;  %v332_v63 = vld [vmem:[#allocation8 + $0x128] sm:$0xff]  ;;  %v1308_v1 = vpack.c.bf16 %v360_v61, %v357_v57  ;;  %v309_v2 = vld [vmem:[#allocation8 + $0x70] sm:$0xff]  ;;  %v363_v5 = vld [vmem:[#allocation8 + $0x220] sm:$0xff]  ;;  %v1194_v8 = vpack.c.bf16 %v328_v60, %v325_v59 }
  0x90   :  { %v312_v3 = vld [vmem:[#allocation8 + $0x88] sm:$0xff]  ;;  %v366_v6 = vld [vmem:[#allocation8 + $0x238] sm:$0xff]  ;;  %v331_v9 = vld [vmem:[#allocation8 + $0x120] sm:$0xff]  ;;  %v1196_v13 = vpack.c.bf16 %v335_v4, %v332_v63 }
  0x91   :  { %1183 = vmatpush1.bf16.msra.mxu0 %v1182_v33  ;;  %v1310_v7 = vpack.c.bf16 %v312_v3, %v309_v2  ;;  %v1312_v10 = vpack.c.bf16 %v366_v6, %v363_v5  ;;  %v315_v11 = vld [vmem:[#allocation8 + $0xa0] sm:$0xff]  ;;  %v318_v12 = vld [vmem:[#allocation8 + $0xb8] sm:$0xff]  ;;  %v369_v15 = vld [vmem:[#allocation8 + $0x250] sm:$0xff] }
  0x92   :  { %1185 = vmatprep.subr.bf16.mxu0 %v1184_v34  ;;  %1307 = vmatpush3.bf16.msra.mxu1 %v1306_v56  ;;  %v334_v14 = vld [vmem:[#allocation8 + $0x138] sm:$0xff]  ;;  %v372_v16 = vld [vmem:[#allocation8 + $0x268] sm:$0xff]  ;;  %v341_v18 = vld [vmem:[#allocation8 + $0x170] sm:$0xff]  ;;  %v1314_v19 = vpack.c.bf16 %v318_v12, %v315_v11 }
  0x93   :  { %1309 = vmatprep.subr.bf16.mxu1 %v1308_v1  ;;  %v338_v17 = vld [vmem:[#allocation8 + $0x158] sm:$0xff]  ;;  %v1198_v20 = vpack.c.bf16 %v334_v14, %v331_v9  ;;  %v337_v21 = vld [vmem:[#allocation8 + $0x150] sm:$0xff]  ;;  %v1316_v22 = vpack.c.bf16 %v372_v16, %v369_v15  ;;  %v324_v24 = vld [vmem:[#allocation8 + $0xe8] sm:$0xff] }
  0x94   :  { %v321_v23 = vld [vmem:[#allocation8 + $0xd0] sm:$0xff]  ;;  %v1200_v25 = vpack.c.bf16 %v341_v18, %v338_v17  ;;  %v340_v26 = vld [vmem:[#allocation8 + $0x168] sm:$0xff]  ;;  %v375_v27 = vld [vmem:[#allocation8 + $0x280] sm:$0xff] }
  0x95   :  { %1187 = vmatpush1.bf16.msra.mxu0 %v1186_v43  ;;  %v378_v28 = vld [vmem:[#allocation8 + $0x298] sm:$0xff]  ;;  %v344_v29 = vld [vmem:[#allocation8 + $0x188] sm:$0xff]  ;;  %v347_v30 = vld [vmem:[#allocation8 + $0x1a0] sm:$0xff]  ;;  %v1318_v31 = vpack.c.bf16 %v324_v24, %v321_v23  ;;  %v1202_v32 = vpack.c.bf16 %v340_v26, %v337_v21 }
  0x96   :  { %1189 = vmatprep.subr.bf16.mxu0 %v1188_v47  ;;  %1311 = vmatpush3.bf16.msra.mxu1 %v1310_v7  ;;  %v343_v33 = vld [vmem:[#allocation8 + $0x180] sm:$0xff]  ;;  %v1320_v34 = vpack.c.bf16 %v378_v28, %v375_v27  ;;  %v330_v36 = vld [vmem:[#allocation8 + $0x118] sm:$0xff]  ;;  %v1204_v37 = vpack.c.bf16 %v347_v30, %v344_v29  ;;  %v381_v39 = vld [vmem:[#allocation8 + $0x2b0] sm:$0xff] }
  0x97   :  { %1313 = vmatprep.subr.bf16.mxu1 %v1312_v10  ;;  %v327_v35 = vld [vmem:[#allocation8 + $0x100] sm:$0xff]  ;;  %v346_v38 = vld [vmem:[#allocation8 + $0x198] sm:$0xff]  ;;  %v384_v40 = vld [vmem:[#allocation8 + $0x2c8] sm:$0xff] }
  0x98   :  { %v350_v41 = vld [vmem:[#allocation8 + $0x1b8] sm:$0xff]  ;;  %v353_v42 = vld [vmem:[#allocation8 + $0x1d0] sm:$0xff]  ;;  %v1322_v43 = vpack.c.bf16 %v330_v36, %v327_v35  ;;  %v1206_v44 = vpack.c.bf16 %v346_v38, %v343_v33  ;;  %v1324_v45 = vpack.c.bf16 %v384_v40, %v381_v39  ;;  %v336_v47 = vld [vmem:[#allocation8 + $0x148] sm:$0xff]  ;;  %v125_v38 = vlaneseq }
  0x99   :  { %1191 = vmatpush1.bf16.msra.mxu0 %v1190_v58  ;;  %v333_v46 = vld [vmem:[#allocation8 + $0x130] sm:$0xff]  ;;  %v1208_v48 = vpack.c.bf16 %v353_v42, %v350_v41  ;;  %v352_v50 = vld [vmem:[#allocation8 + $0x1c8] sm:$0xff]  ;;  %v359_v52 = vld [vmem:[#allocation8 + $0x200] sm:$0xff] }
  0x9a   :  { %1193 = vmatprep.subr.bf16.mxu0 %v1192_v62  ;;  %1315 = vmatpush3.bf16.msra.mxu1 %v1314_v19  ;;  %v349_v49 = vld [vmem:[#allocation8 + $0x1b0] sm:$0xff]  ;;  %v356_v51 = vld [vmem:[#allocation8 + $0x1e8] sm:$0xff]  ;;  %v1326_v53 = vpack.c.bf16 %v336_v47, %v333_v46  ;;  %v355_v56 = vld [vmem:[#allocation8 + $0x1e0] sm:$0xff]  ;;  %v1774_v39 = vshrl.u32 %v125_v38, 7 }
  0x9b   :  { %1317 = vmatprep.subr.bf16.mxu1 %v1316_v22  ;;  %v1210_v54 = vpack.c.bf16 %v352_v50, %v349_v49  ;;  %v1212_v55 = vpack.c.bf16 %v359_v52, %v356_v51  ;;  %v358_v57 = vld [vmem:[#allocation8 + $0x1f8] sm:$0xff]  ;;  %v365_v59 = vld [vmem:[#allocation8 + $0x230] sm:$0xff]  ;;  %v364_v63 = vld [vmem:[#allocation8 + $0x228] sm:$0xff] }
  0x9c   :  { %v362_v58 = vld [vmem:[#allocation8 + $0x218] sm:$0xff]  ;;  %v1214_v60 = vpack.c.bf16 %v358_v57, %v355_v56  ;;  %v361_v62 = vld [vmem:[#allocation8 + $0x210] sm:$0xff]  ;;  %v368_v1 = vld [vmem:[#allocation8 + $0x248] sm:$0xff]  ;;  %v127_v40 = vsub.s32 0, %v1774_v39  ;;  %v131_v42 = vsub.s32 1, %v1774_v39 }
  0x9d   :  { %1195 = vmatpush1.bf16.msra.mxu0 %v1194_v8  ;;  %v1216_v61 = vpack.c.bf16 %v365_v59, %v362_v58  ;;  %v371_v2 = vld [vmem:[#allocation8 + $0x260] sm:$0xff]  ;;  %v1218_v3 = vpack.c.bf16 %v364_v63, %v361_v62  ;;  %v370_v6 = vld [vmem:[#allocation8 + $0x258] sm:$0xff]  ;;  %v377_v8 = vld [vmem:[#allocation8 + $0x290] sm:$0xff] }
  0x9e   :  { %1197 = vmatprep.subr.bf16.mxu0 %v1196_v13  ;;  %1319 = vmatpush3.bf16.msra.mxu1 %v1318_v31  ;;  %v1220_v4 = vpack.c.bf16 %v371_v2, %v368_v1  ;;  %v367_v5 = vld [vmem:[#allocation8 + $0x240] sm:$0xff]  ;;  %v374_v7 = vld [vmem:[#allocation8 + $0x278] sm:$0xff]  ;;  %v373_v11 = vld [vmem:[#allocation8 + $0x270] sm:$0xff] }
  0x9f   :  { %1321 = vmatprep.subr.bf16.mxu1 %v1320_v34  ;;  %v1222_v9 = vpack.c.bf16 %v370_v6, %v367_v5  ;;  %v1224_v10 = vpack.c.bf16 %v377_v8, %v374_v7  ;;  %v376_v12 = vld [vmem:[#allocation8 + $0x288] sm:$0xff]  ;;  %v383_v14 = vld [vmem:[#allocation8 + $0x2c0] sm:$0xff]  ;;  %v382_v18 = vld [vmem:[#allocation8 + $0x2b8] sm:$0xff] }
  0xa0   :  { %v380_v13 = vld [vmem:[#allocation8 + $0x2a8] sm:$0xff]  ;;  %v1226_v15 = vpack.c.bf16 %v376_v12, %v373_v11  ;;  %v379_v17 = vld [vmem:[#allocation8 + $0x2a0] sm:$0xff]  ;;  %v389_v21 = vld [vmem:[#allocation8 + $0x2f0] sm:$0xff] }
  0xa1   :  { %1199 = vmatpush1.bf16.msra.mxu0 %v1198_v20  ;;  %v1228_v16 = vpack.c.bf16 %v383_v14, %v380_v13  ;;  %v1230_v19 = vpack.c.bf16 %v382_v18, %v379_v17  ;;  %v386_v20 = vld [vmem:[#allocation8 + $0x2d8] sm:$0xff]  ;;  %v387_v22 = vld [vmem:[#allocation8 + $0x2e0] sm:$0xff]  ;;  %v388_v26 = vld [vmem:[#allocation8 + $0x2e8] sm:$0xff] }
  0xa2   :  { %1201 = vmatprep.subr.bf16.mxu0 %v1200_v25  ;;  %1323 = vmatpush3.bf16.msra.mxu1 %v1322_v43  ;;  %v1232_v23 = vpack.c.bf16 %v389_v21, %v386_v20  ;;  %v390_v24 = vld [vmem:[#allocation8 + $0x2f8] sm:$0xff]  ;;  %v385_v25 = vld [vmem:[#allocation8 + $0x2d0] sm:$0xff]  ;;  %v339_v29 = vld [vmem:[#allocation8 + $0x160] sm:$0xff]  ;;  %v139_v43 = vsub.s32 3, %v1774_v39 }
  0xa3   :  { %1325 = vmatprep.subr.bf16.mxu1 %v1324_v45  ;;  %v1328_v27 = vpack.c.bf16 %v390_v24, %v387_v22  ;;  %v1234_v28 = vpack.c.bf16 %v388_v26, %v385_v25  ;;  %v342_v30 = vld [vmem:[#allocation8 + $0x178] sm:$0xff]  ;;  %v395_v33 = vld [vmem:[#allocation8 + $0x320] sm:$0xff]  ;;  %v441_v34 = vld [vmem:[#allocation8 + $0x490] sm:$0xff] }
  0xa4   :  { %v1330_v31 = vpack.c.bf16 %v342_v30, %v339_v29  ;;  %v444_v36 = vld [vmem:[#allocation8 + $0x4a8] sm:$0xff]  ;;  %v1777_v41 = vld [vmem:[#allocation7] sm:$0xf]  ;;  %v391_v47 = vld [vmem:[#allocation8 + $0x300] sm:$0xff] }
  0xa5   :  { %1203 = vmatpush1.bf16.msra.mxu0 %v1202_v32  ;;  %v392_v32 = vld [vmem:[#allocation8 + $0x308] sm:$0xff]  ;;  %v132_v45 = vrot.slane %v1777_v41, %v131_v42  ;;  %v140_v49 = vrot.slane %v1777_v41, %v139_v43  ;;  %v393_v52 = vld [vmem:[#allocation8 + $0x310] sm:$0xff]  ;;  %v447_v57 = vld [vmem:[#allocation8 + $0x4c0] sm:$0xff] }
  0xa6   :  { %1205 = vmatprep.subr.bf16.mxu0 %v1204_v37  ;;  %1327 = vmatpush3.bf16.msra.mxu1 %v1326_v53  ;;  %v1236_v35 = vpack.c.bf16 %v395_v33, %v392_v32  ;;  %v1332_v37 = vpack.c.bf16 %v444_v36, %v441_v34  ;;  %v396_v53 = vld [vmem:[#allocation8 + $0x328] sm:$0xff]  ;;  %v401_v56 = vld [vmem:[#allocation8 + $0x350] sm:$0xff]  ;;  %v450_v58 = vld [vmem:[#allocation8 + $0x4d8] sm:$0xff] }
  0xa7   :  { %1329 = vmatprep.subr.bf16.mxu1 %v1328_v27  ;;  %v1334_v63 = vpack.c.bf16 %v396_v53, %v393_v52  ;;  %v397_v1 = vld [vmem:[#allocation8 + $0x330] sm:$0xff]  ;;  %v400_v2 = vld [vmem:[#allocation8 + $0x348] sm:$0xff]  ;;  %v1336_v6 = vpack.c.bf16 %v450_v58, %v447_v57  ;;  %v399_v7 = vld [vmem:[#allocation8 + $0x340] sm:$0xff] }
  0xa8   :  { %v402_v8 = vld [vmem:[#allocation8 + $0x358] sm:$0xff]  ;;  %v453_v11 = vld [vmem:[#allocation8 + $0x4f0] sm:$0xff]  ;;  %v456_v12 = vld [vmem:[#allocation8 + $0x508] sm:$0xff]  ;;  %v1242_v14 = vpack.c.bf16 %v400_v2, %v397_v1 }
  0xa9   :  { %1207 = vmatpush1.bf16.msra.mxu0 %v1206_v44  ;;  %v128_v44 = vrot.slane %v1777_v41, %v127_v40  ;;  %v406_v17 = vld [vmem:[#allocation8 + $0x378] sm:$0xff]  ;;  %v405_v20 = vld [vmem:[#allocation8 + $0x370] sm:$0xff]  ;;  %v408_v21 = vld [vmem:[#allocation8 + $0x388] sm:$0xff] }
  0xaa   :  { %1209 = vmatprep.subr.bf16.mxu0 %v1208_v48  ;;  %1331 = vmatpush3.bf16.msra.mxu1 %v1330_v31  ;;  %v394_v48 = vld [vmem:[#allocation8 + $0x318] sm:$0xff]  ;;  %v459_v24 = vld [vmem:[#allocation8 + $0x520] sm:$0xff]  ;;  %v1342_v27 = vpack.c.bf16 %v408_v21, %v405_v20  ;;  %v412_v29 = vld [vmem:[#allocation8 + $0x3a8] sm:$0xff] }
  0xab   :  { %1333 = vmatprep.subr.bf16.mxu1 %v1332_v37  ;;  %v1238_v62 = vpack.c.bf16 %v394_v48, %v391_v47  ;;  %v410_v22 = vld [vmem:[#allocation8 + $0x398] sm:$0xff]  ;;  %v411_v32 = vld [vmem:[#allocation8 + $0x3a0] sm:$0xff]  ;;  %v416_v34 = vld [vmem:[#allocation8 + $0x3c8] sm:$0xff] }
  0xac   :  { %v462_v25 = vld [vmem:[#allocation8 + $0x538] sm:$0xff]  ;;  %v465_v36 = vld [vmem:[#allocation8 + $0x550] sm:$0xff]  ;;  %v468_v37 = vld [vmem:[#allocation8 + $0x568] sm:$0xff] }
  0xad   :  { %1211 = vmatpush1.bf16.msra.mxu0 %v1210_v54  ;;  %v398_v54 = vld [vmem:[#allocation8 + $0x338] sm:$0xff]  ;;  %v1344_v31 = vpack.c.bf16 %v462_v25, %v459_v24  ;;  %v1348_v47 = vpack.c.bf16 %v468_v37, %v465_v36  ;;  %v417_v48 = vld [vmem:[#allocation8 + $0x3d0] sm:$0xff]  ;;  %v471_v52 = vld [vmem:[#allocation8 + $0x580] sm:$0xff] }
  0xae   :  { %1213 = vmatprep.subr.bf16.mxu0 %v1212_v55  ;;  %v1240_v5 = vpack.c.bf16 %v401_v56, %v398_v54  ;;  %v414_v33 = vld [vmem:[#allocation8 + $0x3b8] sm:$0xff]  ;;  %v421_v56 = vld [vmem:[#allocation8 + $0x3f0] sm:$0xff]  ;;  %v424_v57 = vld [vmem:[#allocation8 + $0x408] sm:$0xff] }
  0xaf   :  { %v1346_v43 = vpack.c.bf16 %v414_v33, %v411_v32  ;;  %v474_v53 = vld [vmem:[#allocation8 + $0x598] sm:$0xff]  ;;  %v431_v1 = vld [vmem:[#allocation8 + $0x440] sm:$0xff]  ;;  %v477_v2 = vld [vmem:[#allocation8 + $0x5b0] sm:$0xff] }
  0xb0   :  { %v433_v20 = vld [vmem:[#allocation8 + $0x450] sm:$0xff]  ;;  %v435_v24 = vld [vmem:[#allocation8 + $0x460] sm:$0xff]  ;;  %v438_v25 = vld [vmem:[#allocation8 + $0x478] sm:$0xff] }
  0xb1   :  { %1215 = vmatpush1.bf16.msra.mxu0 %v1214_v60  ;;  %v442_v32 = vld [vmem:[#allocation8 + $0x498] sm:$0xff] }
  0xb2   :  { %1217 = vmatprep.subr.bf16.mxu0 %v1216_v61  ;;  %v446_v33 = vld [vmem:[#allocation8 + $0x4b8] sm:$0xff] }
  0xb5   :  { %1219 = vmatpush1.bf16.msra.mxu0 %v1218_v3 }
  0xb6   :  { %1221 = vmatprep.subr.bf16.mxu0 %v1220_v4 }
  0xb9   :  { %1223 = vmatpush1.bf16.msra.mxu0 %v1222_v9  ;;  %v404_v9 = vld [vmem:[#allocation8 + $0x368] sm:$0xff] }
  0xba   :  { %1225 = vmatprep.subr.bf16.mxu0 %v1224_v10  ;;  %v407_v10 = vld [vmem:[#allocation8 + $0x380] sm:$0xff] }
  0xbb   :  { %v1244_v18 = vpack.c.bf16 %v407_v10, %v404_v9 }
  0xbd   :  { %1227 = vmatpush1.bf16.msra.mxu0 %v1226_v15  ;;  %v1338_v15 = vpack.c.bf16 %v402_v8, %v399_v7  ;;  %v427_v7 = vld [vmem:[#allocation8 + $0x420] sm:$0xff]  ;;  %v430_v8 = vld [vmem:[#allocation8 + $0x438] sm:$0xff] }
  0xbe   :  { %1229 = vmatprep.subr.bf16.mxu0 %v1228_v16  ;;  %v403_v16 = vld [vmem:[#allocation8 + $0x360] sm:$0xff] }
  0xbf   :  { %v1246_v26 = vpack.c.bf16 %v406_v17, %v403_v16  ;;  %v486_v16 = vld [vmem:[#allocation8 + $0x5f8] sm:$0xff] }
  0xc1   :  { %1231 = vmatpush1.bf16.msra.mxu0 %v1230_v19  ;;  %v1340_v19 = vpack.c.bf16 %v456_v12, %v453_v11  ;;  %v429_v11 = vld [vmem:[#allocation8 + $0x430] sm:$0xff]  ;;  %v432_v12 = vld [vmem:[#allocation8 + $0x448] sm:$0xff] }
  0xc2   :  { %1233 = vmatprep.subr.bf16.mxu0 %v1232_v23  ;;  %v413_v23 = vld [vmem:[#allocation8 + $0x3b0] sm:$0xff] }
  0xc3   :  { %v1248_v30 = vpack.c.bf16 %v413_v23, %v410_v22  ;;  %v436_v23 = vld [vmem:[#allocation8 + $0x468] sm:$0xff] }
  0xc5   :  { %1235 = vmatpush1.bf16.msra.mxu0 %v1234_v28  ;;  %v409_v28 = vld [vmem:[#allocation8 + $0x390] sm:$0xff] }
  0xc6   :  { %1237 = vmatprep.subr.bf16.mxu0 %v1236_v35  ;;  %v419_v35 = vld [vmem:[#allocation8 + $0x3e0] sm:$0xff]  ;;  %v1250_v38 = vpack.c.bf16 %v412_v29, %v409_v28  ;;  %v1362_v29 = vpack.c.bf16 %v438_v25, %v435_v24  ;;  %v807_v25 = vld [vmem:[#allocation11 + $0x90] sm:$0xff] }
 0x15b   :  { %v215_v46 = vpop.f32.mrb[0].mxu0 }
 0x15c   :  { %v216_v50 = vadd.f32 %v215_v46, %v128_v44  ;;  %v217_v51 = vpop.f32.mrb[1].mxu0  ;;  %v415_v44 = vld [vmem:[#allocation8 + $0x3c0] sm:$0xff]  ;;  %v1252_v46 = vpack.c.bf16 %v419_v35, %v416_v34  ;;  %v449_v34 = vld [vmem:[#allocation8 + $0x4d0] sm:$0xff] }
 0x15d   :  { %v218_v55 = vadd.f32 %v217_v51, %v132_v45  ;;  %v1788_v59 = vpop.f32.mrb[0].mxu1  ;;  %v418_v45 = vld [vmem:[#allocation8 + $0x3d8] sm:$0xff]  ;;  %v425_v51 = vld [vmem:[#allocation8 + $0x410] sm:$0xff]  ;;  %v1272_v37 = vpack.c.bf16 %v449_v34, %v446_v33  ;;  %v793_v33 = vld [vmem:[#allocation11 + $0x20] sm:$0xff] }
 0x15e   :  { %v288_v60 = vpop.f32.mrb[1].mxu1  ;;  %v291_v4 = vmax.f32 %v216_v50, 0.0  ;;  %v422_v50 = vld [vmem:[#allocation8 + $0x3f8] sm:$0xff]  ;;  %v1254_v54 = vpack.c.bf16 %v418_v45, %v415_v44  ;;  %v455_v44 = vld [vmem:[#allocation8 + $0x500] sm:$0xff]  ;;  %v794_v34 = vld [vmem:[#allocation11 + $0x28] sm:$0xff] }
 0x15f   :  { %v292_v61 = vmax.f32 %v218_v55, 0.0  ;;  %v289_v3 = vadd.f32 %v288_v60, %v140_v49  ;;  %v420_v49 = vld [vmem:[#allocation8 + $0x3e8] sm:$0xff]  ;;  %v1256_v58 = vpack.c.bf16 %v425_v51, %v422_v50  ;;  %v1352_v60 = vpack.c.bf16 %v474_v53, %v471_v52  ;;  %v461_v50 = vld [vmem:[#allocation8 + $0x530] sm:$0xff] }
 0x160   :  { %v1350_v55 = vpack.c.bf16 %v420_v49, %v417_v48  ;;  %v454_v48 = vld [vmem:[#allocation8 + $0x4f8] sm:$0xff]  ;;  %v457_v53 = vld [vmem:[#allocation8 + $0x510] sm:$0xff] }
 0x161   :  { %568 = vmatprep.mubr.f32.mxu0 %v292_v61  ;;  %710 = vmatprep.mubr.f32.mxu1 %v292_v61  ;;  %v294_v13 = vmax.f32 %v289_v3, 0.0  ;;  %v423_v61 = vld [vmem:[#allocation8 + $0x400] sm:$0xff]  ;;  %v480_v3 = vld [vmem:[#allocation8 + $0x5c8] sm:$0xff]  ;;  %v458_v49 = vld [vmem:[#allocation8 + $0x518] sm:$0xff] }
 0x162   :  { %569 = vmatmul.mubr.f32.vlgmr.msra.gmra.mrb[2].mxu0 %v291_v4  ;;  %711 = vmatmul.mubr.f32.vlgmr.msra.gmra.mrb[2].mxu1 %v291_v4  ;;  %v135_v4 = vsub.s32 2, %v1774_v39  ;;  %v1356_v10 = vpack.c.bf16 %v480_v3, %v477_v2  ;;  %v1280_v52 = vpack.c.bf16 %v461_v50, %v458_v49  ;;  %v469_v3 = vld [vmem:[#allocation8 + $0x570] sm:$0xff]  ;;  %v825_v39 = vld [vmem:[#allocation11 + $0x120] sm:$0xff] }
 0x163   :  { %1239 = vmatpush1.bf16.msra.mxu0 %v1238_v62  ;;  %1335 = vmatpush3.bf16.msra.mxu1 %v1334_v63  ;;  %v426_v62 = vld [vmem:[#allocation8 + $0x418] sm:$0xff]  ;;  %v428_v63 = vld [vmem:[#allocation8 + $0x428] sm:$0xff] }
 0x164   :  { %1241 = vmatprep.subr.bf16.mxu0 %v1240_v5  ;;  %1337 = vmatprep.subr.bf16.mxu1 %v1336_v6  ;;  %v1258_v5 = vpack.c.bf16 %v424_v57, %v421_v56  ;;  %v1354_v6 = vpack.c.bf16 %v426_v62, %v423_v61  ;;  %v1260_v9 = vpack.c.bf16 %v431_v1, %v428_v63  ;;  %v467_v56 = vld [vmem:[#allocation8 + $0x560] sm:$0xff]  ;;  %v466_v61 = vld [vmem:[#allocation8 + $0x558] sm:$0xff]  ;;  %v473_v63 = vld [vmem:[#allocation8 + $0x590] sm:$0xff] }
 0x165   :  { %780 = vmatprep.mubr.f32.mxu1 %v294_v13  ;;  %639 = vmatprep.mubr.f32.mxu0 %v294_v13  ;;  %v434_v13 = vld [vmem:[#allocation8 + $0x458] sm:$0xff]  ;;  %v136_v17 = vrot.slane %v1777_v41, %v135_v4  ;;  %v1266_v41 = vpack.c.bf16 %v436_v23, %v433_v20  ;;  %v806_v20 = vld [vmem:[#allocation11 + $0x88] sm:$0xff] }
 0x166   :  { %v470_v62 = vld [vmem:[#allocation8 + $0x578] sm:$0xff]  ;;  %v790_v23 = vld [vmem:[#allocation11 + $0x8] sm:$0xff] }
 0x167   :  { %1243 = vmatpush1.bf16.msra.mxu0 %v1242_v14  ;;  %1339 = vmatpush3.bf16.msra.mxu1 %v1338_v15  ;;  %v437_v14 = vld [vmem:[#allocation8 + $0x470] sm:$0xff]  ;;  %v483_v15 = vld [vmem:[#allocation8 + $0x5e0] sm:$0xff]  ;;  %v1795_v28 = vadd.f32 %v1788_v59, %v136_v17  ;;  %v1288_v2 = vpack.c.bf16 %v473_v63, %v470_v62  ;;  %v484_v17 = vld [vmem:[#allocation8 + $0x5e8] sm:$0xff] }
 0x168   :  { %1245 = vmatprep.subr.bf16.mxu0 %v1244_v18  ;;  %1341 = vmatprep.subr.bf16.mxu1 %v1340_v19  ;;  %v1262_v18 = vpack.c.bf16 %v430_v8, %v427_v7  ;;  %v1358_v19 = vpack.c.bf16 %v432_v12, %v429_v11  ;;  %v1264_v21 = vpack.c.bf16 %v437_v14, %v434_v13  ;;  %v445_v59 = vld [vmem:[#allocation8 + $0x4b0] sm:$0xff]  ;;  %v479_v7 = vld [vmem:[#allocation8 + $0x5c0] sm:$0xff]  ;;  %v478_v11 = vld [vmem:[#allocation8 + $0x5b8] sm:$0xff] }
 0x169   :  { %v1360_v22 = vpack.c.bf16 %v486_v16, %v483_v15  ;;  %v293_v35 = vmax.f32 %v1795_v28, 0.0  ;;  %v482_v12 = vld [vmem:[#allocation8 + $0x5d8] sm:$0xff]  ;;  %v485_v13 = vld [vmem:[#allocation8 + $0x5f0] sm:$0xff] }
 0x16a   :  { %v1296_v15 = vpack.c.bf16 %v485_v13, %v482_v12  ;;  %v481_v16 = vld [vmem:[#allocation8 + $0x5d0] sm:$0xff]  ;;  %v487_v12 = vld [vmem:[#allocation10] sm:$0x7] }
 0x16b   :  { %1247 = vmatpush1.bf16.msra.mxu0 %v1246_v26  ;;  %1343 = vmatpush3.bf16.msra.mxu1 %v1342_v27  ;;  %v440_v26 = vld [vmem:[#allocation8 + $0x488] sm:$0xff]  ;;  %v443_v27 = vld [vmem:[#allocation8 + $0x4a0] sm:$0xff]  ;;  %v815_v50 = vld [vmem:[#allocation11 + $0xd0] sm:$0xff]  ;;  %v500_v13 = vrot.slane %v487_v12, %v135_v4 }
 0x16c   :  { %1249 = vmatprep.subr.bf16.mxu0 %v1248_v30  ;;  %1345 = vmatprep.subr.bf16.mxu1 %v1344_v31  ;;  %v1268_v30 = vpack.c.bf16 %v443_v27, %v440_v26  ;;  %v439_v31 = vld [vmem:[#allocation8 + $0x480] sm:$0xff]  ;;  %v791_v27 = vld [vmem:[#allocation11 + $0x10] sm:$0xff]  ;;  %v798_v49 = vld [vmem:[#allocation11 + $0x48] sm:$0xff] }
 0x16d   :  { %v1270_v36 = vpack.c.bf16 %v442_v32, %v439_v31  ;;  %v808_v26 = vld [vmem:[#allocation11 + $0x98] sm:$0xff]  ;;  %v802_v62 = vld [vmem:[#allocation11 + $0x68] sm:$0xff] }
 0x16e   :  { %v1368_v28 = vpack.c.bf16 %v808_v26, %v807_v25  ;;  %v822_v25 = vld [vmem:[#allocation11 + $0x108] sm:$0xff] }
 0x16f   :  { %1251 = vmatpush1.bf16.msra.mxu0 %v1250_v38  ;;  %1347 = vmatpush3.bf16.msra.mxu1 %v1346_v43  ;;  %v448_v38 = vld [vmem:[#allocation8 + $0x4c8] sm:$0xff] }
 0x170   :  { %1253 = vmatprep.subr.bf16.mxu0 %v1252_v46  ;;  %1349 = vmatprep.subr.bf16.mxu1 %v1348_v47  ;;  %v452_v43 = vld [vmem:[#allocation8 + $0x4e8] sm:$0xff]  ;;  %v1274_v45 = vpack.c.bf16 %v448_v38, %v445_v59  ;;  %v451_v47 = vld [vmem:[#allocation8 + $0x4e0] sm:$0xff]  ;;  %v795_v38 = vld [vmem:[#allocation11 + $0x30] sm:$0xff] }
 0x171   :  { %v1276_v46 = vpack.c.bf16 %v455_v44, %v452_v43  ;;  %v1278_v51 = vpack.c.bf16 %v454_v48, %v451_v47  ;;  %v796_v43 = vld [vmem:[#allocation11 + $0x38] sm:$0xff]  ;;  %v813_v44 = vld [vmem:[#allocation11 + $0xc0] sm:$0xff] }
 0x172   :  { %v797_v48 = vld [vmem:[#allocation11 + $0x40] sm:$0xff] }
 0x173   :  { %1255 = vmatpush1.bf16.msra.mxu0 %v1254_v54  ;;  %1351 = vmatpush3.bf16.msra.mxu1 %v1350_v55  ;;  %v460_v54 = vld [vmem:[#allocation8 + $0x528] sm:$0xff] }
 0x174   :  { %1257 = vmatprep.subr.bf16.mxu0 %v1256_v58  ;;  %1353 = vmatprep.subr.bf16.mxu1 %v1352_v60  ;;  %v464_v55 = vld [vmem:[#allocation8 + $0x548] sm:$0xff]  ;;  %v1282_v57 = vpack.c.bf16 %v460_v54, %v457_v53  ;;  %v463_v60 = vld [vmem:[#allocation8 + $0x540] sm:$0xff]  ;;  %v799_v54 = vld [vmem:[#allocation11 + $0x50] sm:$0xff] }
 0x175   :  { %v1284_v58 = vpack.c.bf16 %v467_v56, %v464_v55  ;;  %v1286_v1 = vpack.c.bf16 %v466_v61, %v463_v60  ;;  %v800_v55 = vld [vmem:[#allocation11 + $0x58] sm:$0xff]  ;;  %v817_v56 = vld [vmem:[#allocation11 + $0xe0] sm:$0xff] }
 0x176   :  { %v801_v61 = vld [vmem:[#allocation11 + $0x60] sm:$0xff] }
 0x177   :  { %1259 = vmatpush1.bf16.msra.mxu0 %v1258_v5  ;;  %1355 = vmatpush3.bf16.msra.mxu1 %v1354_v6  ;;  %v472_v5 = vld [vmem:[#allocation8 + $0x588] sm:$0xff]  ;;  %v1390_v63 = vpack.c.bf16 %v802_v62, %v801_v61 }
 0x178   :  { %1261 = vmatprep.subr.bf16.mxu0 %v1260_v9  ;;  %1357 = vmatprep.subr.bf16.mxu1 %v1356_v10  ;;  %v476_v6 = vld [vmem:[#allocation8 + $0x5a8] sm:$0xff]  ;;  %v1290_v8 = vpack.c.bf16 %v472_v5, %v469_v3  ;;  %v475_v10 = vld [vmem:[#allocation8 + $0x5a0] sm:$0xff]  ;;  %v803_v5 = vld [vmem:[#allocation11 + $0x70] sm:$0xff] }
 0x179   :  { %v1292_v9 = vpack.c.bf16 %v479_v7, %v476_v6  ;;  %v1294_v14 = vpack.c.bf16 %v478_v11, %v475_v10  ;;  %v804_v6 = vld [vmem:[#allocation11 + $0x78] sm:$0xff] }
 0x17a   :  { %v1394_v7 = vpack.c.bf16 %v804_v6, %v803_v5 }
 0x17b   :  { %1263 = vmatpush1.bf16.msra.mxu0 %v1262_v18  ;;  %1359 = vmatpush3.bf16.msra.mxu1 %v1358_v19  ;;  %v1298_v18 = vpack.c.bf16 %v484_v17, %v481_v16  ;;  %v805_v19 = vld [vmem:[#allocation11 + $0x80] sm:$0xff] }
 0x17c   :  { %1265 = vmatprep.subr.bf16.mxu0 %v1264_v21  ;;  %1361 = vmatprep.subr.bf16.mxu1 %v1360_v22  ;;  %v1364_v21 = vpack.c.bf16 %v806_v20, %v805_v19  ;;  %v789_v22 = vld [vmem:[#allocation11] sm:$0xff]  ;;  %v492_v19 = vrot.slane %v487_v12, %v127_v40  ;;  %v496_v20 = vrot.slane %v487_v12, %v131_v42  ;;  %v826_v40 = vld [vmem:[#allocation11 + $0x128] sm:$0xff] }
 0x17d   :  { %v1366_v24 = vpack.c.bf16 %v790_v23, %v789_v22  ;;  %v1403_v42 = vpack.c.bf16 %v826_v40, %v825_v39 }
 0x17f   :  { %1267 = vmatpush1.bf16.msra.mxu0 %v1266_v41  ;;  %1363 = vmatpush3.bf16.msra.mxu1 %v1362_v29  ;;  %v792_v41 = vld [vmem:[#allocation11 + $0x18] sm:$0xff]  ;;  %v809_v29 = vld [vmem:[#allocation11 + $0xa0] sm:$0xff] }
 0x180   :  { %1269 = vmatprep.subr.bf16.mxu0 %v1268_v30  ;;  %1365 = vmatprep.subr.bf16.mxu1 %v1364_v21  ;;  %v810_v30 = vld [vmem:[#allocation11 + $0xa8] sm:$0xff]  ;;  %v1370_v31 = vpack.c.bf16 %v792_v41, %v791_v27  ;;  %v823_v41 = vld [vmem:[#allocation11 + $0x110] sm:$0xff] }
 0x181   :  { %v1372_v32 = vpack.c.bf16 %v810_v30, %v809_v29  ;;  %v824_v29 = vld [vmem:[#allocation11 + $0x118] sm:$0xff] }
 0x182   :  { %781 = vmatmul.mubr.f32.vlgmr.msra.gmra.mrb[4].mxu1 %v293_v35  ;;  %v1400_v30 = vpack.c.bf16 %v824_v29, %v823_v41 }
 0x183   :  { %1271 = vmatpush1.bf16.msra.mxu0 %v1270_v36  ;;  %1367 = vmatpush3.bf16.msra.mxu1 %v1366_v24  ;;  %v812_v36 = vld [vmem:[#allocation11 + $0xb8] sm:$0xff]  ;;  %v821_v24 = vld [vmem:[#allocation11 + $0x100] sm:$0xff] }
 0x184   :  { %1273 = vmatprep.subr.bf16.mxu0 %v1272_v37  ;;  %1369 = vmatprep.subr.bf16.mxu1 %v1368_v28  ;;  %v1374_v37 = vpack.c.bf16 %v794_v34, %v793_v33  ;;  %v1397_v28 = vpack.c.bf16 %v822_v25, %v821_v24  ;;  %v829_v34 = vld [vmem:[#allocation11 + $0x140] sm:$0xff] }
 0x187   :  { %1275 = vmatpush1.bf16.msra.mxu0 %v1274_v45  ;;  %1371 = vmatpush3.bf16.msra.mxu1 %v1370_v31  ;;  %v814_v45 = vld [vmem:[#allocation11 + $0xc8] sm:$0xff]  ;;  %v827_v31 = vld [vmem:[#allocation11 + $0x130] sm:$0xff] }
 0x188   :  { %1277 = vmatprep.subr.bf16.mxu0 %v1276_v46  ;;  %1373 = vmatprep.subr.bf16.mxu1 %v1372_v32  ;;  %v1378_v46 = vpack.c.bf16 %v796_v43, %v795_v38  ;;  %v1380_v47 = vpack.c.bf16 %v814_v45, %v813_v44  ;;  %v828_v32 = vld [vmem:[#allocation11 + $0x138] sm:$0xff]  ;;  %v833_v38 = vld [vmem:[#allocation11 + $0x160] sm:$0xff]  ;;  %v834_v43 = vld [vmem:[#allocation11 + $0x168] sm:$0xff] }
 0x189   :  { %v1406_v33 = vpack.c.bf16 %v828_v32, %v827_v31  ;;  %v1415_v44 = vpack.c.bf16 %v834_v43, %v833_v38  ;;  %v835_v45 = vld [vmem:[#allocation11 + $0x170] sm:$0xff] }
 0x18b   :  { %1279 = vmatpush1.bf16.msra.mxu0 %v1278_v51  ;;  %1375 = vmatpush3.bf16.msra.mxu1 %v1374_v37  ;;  %v816_v51 = vld [vmem:[#allocation11 + $0xd8] sm:$0xff]  ;;  %v831_v37 = vld [vmem:[#allocation11 + $0x150] sm:$0xff] }
 0x18c   :  { %1281 = vmatprep.subr.bf16.mxu0 %v1280_v52  ;;  %v1382_v52 = vpack.c.bf16 %v798_v49, %v797_v48  ;;  %v1384_v53 = vpack.c.bf16 %v816_v51, %v815_v50 }
 0x18f   :  { %1283 = vmatpush1.bf16.msra.mxu0 %v1282_v57  ;;  %v818_v57 = vld [vmem:[#allocation11 + $0xe8] sm:$0xff] }
 0x190   :  { %1285 = vmatprep.subr.bf16.mxu0 %v1284_v58  ;;  %v1386_v58 = vpack.c.bf16 %v800_v55, %v799_v54  ;;  %v1388_v60 = vpack.c.bf16 %v818_v57, %v817_v56 }
 0x193   :  { %1287 = vmatpush1.bf16.msra.mxu0 %v1286_v1  ;;  %v819_v1 = vld [vmem:[#allocation11 + $0xf0] sm:$0xff] }
 0x194   :  { %1289 = vmatprep.subr.bf16.mxu0 %v1288_v2  ;;  %v820_v2 = vld [vmem:[#allocation11 + $0xf8] sm:$0xff] }
 0x195   :  { %v1392_v3 = vpack.c.bf16 %v820_v2, %v819_v1 }
 0x197   :  { %1291 = vmatpush1.bf16.msra.mxu0 %v1290_v8  ;;  %v1643_v8 = vmov 0.0|0.0  }
 0x198   :  { %1293 = vmatprep.subr.bf16.mxu0 %v1292_v9 }
 0x19b   :  { %1295 = vmatpush1.bf16.msra.mxu0 %v1294_v14 }
 0x19c   :  { %1297 = vmatprep.subr.bf16.mxu0 %v1296_v15 }
 0x19f   :  { %1299 = vmatpush1.bf16.msra.mxu0 %v1298_v18 }
 0x1a2   :  { %640 = vmatmul.mubr.f32.vlgmr.msra.gmra.mrb[2].mxu0 %v293_v35  ;;  %v811_v35 = vld [vmem:[#allocation11 + $0xb0] sm:$0xff] }
 0x1a3   :  { %v1376_v59 = vpack.c.bf16 %v812_v36, %v811_v35  ;;  %v830_v35 = vld [vmem:[#allocation11 + $0x148] sm:$0xff] }
 0x1a4   :  { %v1409_v36 = vpack.c.bf16 %v830_v35, %v829_v34 }
 0x1a5   :  { %1377 = vmatprep.subr.bf16.mxu1 %v1376_v59  ;;  %v832_v59 = vld [vmem:[#allocation11 + $0x158] sm:$0xff] }
 0x1a6   :  { %1379 = vmatpush3.bf16.msra.mxu1 %v1378_v46  ;;  %v836_v46 = vld [vmem:[#allocation11 + $0x178] sm:$0xff] }
 0x1a7   :  { %1381 = vmatprep.subr.bf16.mxu1 %v1380_v47  ;;  %v1418_v47 = vpack.c.bf16 %v836_v46, %v835_v45 }
 0x1aa   :  { %1383 = vmatpush3.bf16.msra.mxu1 %v1382_v52  ;;  %v1006_v52 = vld [vmem:[#allocation13] ss:$0 sm:$0xff] }
 0x1ab   :  { %1385 = vmatprep.subr.bf16.mxu1 %v1384_v53 }
 0x1ae   :  { %1387 = vmatpush3.bf16.msra.mxu1 %v1386_v58 }
 0x1af   :  { %1389 = vmatprep.subr.bf16.mxu1 %v1388_v60 }
 0x1b2   :  { %1391 = vmatpush3.bf16.msra.mxu1 %v1390_v63 }
 0x1b3   :  { %1393 = vmatprep.subr.bf16.mxu1 %v1392_v3 }
 0x1b6   :  { %1395 = vmatpush3.bf16.msra.mxu1 %v1394_v7 }
 0x1b7   :  { %1396 = vmatprep.subr.bf16.mxu1 %v1643_v8 }
 0x235   :  { %v1039_v9 = vpop.f32.mrb[2].mxu1 }
 0x236   :  { %v1040_v10 = vpop.f32.mrb[3].mxu1 }
 0x237   :  { %v1041_v11 = vadd.f32 %v1040_v10, %v1039_v9 }
 0x239   :  { %v713_v16 = vadd.f32 %v1041_v11, %v500_v13 }
 0x255   :  { %v1074_v14 = vpop.f32.mrb[4].mxu1 }
 0x256   :  { %v1075_v15 = vpop.f32.mrb[5].mxu1 }
 0x257   :  { %v1076_v17 = vadd.f32 %v1075_v15, %v1074_v14 }
 0x259   :  { %v783_v18 = vadd.f32 %v1076_v17, %v713_v16 }
 0x25b   :  { %v788_v48 = vmax.f32 %v783_v18, 0.0 }
 0x275   :  { %v641_v21 = vpop.f32.mrb[2].mxu0 }
 0x276   :  { %v1420_v22 = vadd.f32 %v641_v21, %v492_v19  ;;  %v643_v23 = vpop.f32.mrb[3].mxu0 }
 0x277   :  { %v1421_v26 = vadd.f32 %v643_v23, %v496_v20 }
 0x278   :  { %v786_v4 = vmax.f32 %v1420_v22, 0.0 }
 0x279   :  { %v787_v27 = vmax.f32 %v1421_v26, 0.0 }
 0x27b   :  { %908 = vmatprep.mubr.f32.mxu1 %v787_v27 }
 0x27c   :  { %909 = vmatmul.mubr.f32.vlgmr.msra.gmra.mrb[6].mxu1 %v786_v4 }
 0x27d   :  { %1398 = vmatpush3.bf16.msra.mxu1 %v1397_v28  ;;  %1161 = vmatprep.mubr.msk.f32.mxu1 %vm1644_vm1, %v1642_v0  ;;  %v1412_v0 = vpack.c.bf16 %v832_v59, %v831_v37 }
 0x27e   :  { %1399 = vmatprep.subr.bf16.mxu1 %v1643_v8 }
 0x281   :  { %1401 = vmatpush3.bf16.msra.mxu1 %v1400_v30 }
 0x282   :  { %1402 = vmatprep.subr.bf16.mxu1 %v1643_v8 }
 0x285   :  { %1404 = vmatpush3.bf16.msra.mxu1 %v1403_v42 }
 0x286   :  { %1405 = vmatprep.subr.bf16.mxu1 %v1643_v8 }
 0x289   :  { %1407 = vmatpush3.bf16.msra.mxu1 %v1406_v33 }
 0x28a   :  { %1408 = vmatprep.subr.bf16.mxu1 %v1643_v8 }
 0x28d   :  { %1410 = vmatpush3.bf16.msra.mxu1 %v1409_v36 }
 0x28e   :  { %1411 = vmatprep.subr.bf16.mxu1 %v1643_v8 }
 0x291   :  { %1413 = vmatpush3.bf16.msra.mxu1 %v1412_v0 }
 0x292   :  { %1414 = vmatprep.subr.bf16.mxu1 %v1643_v8 }
 0x295   :  { %1416 = vmatpush3.bf16.msra.mxu1 %v1415_v44 }
 0x296   :  { %1417 = vmatprep.subr.bf16.mxu1 %v1643_v8 }
 0x299   :  { %1419 = vmatpush3.bf16.msra.mxu1 %v1418_v47 }
 0x29c   :  { %1162 = vmatmul.mubr.f32.vlgmr.msra.gmra.mrb[8].mxu1 %v788_v48 }
 0x34f   :  { %v1109_v49 = vpop.f32.mrb[6].mxu1 }
 0x350   :  { %v1110_v50 = vpop.f32.mrb[7].mxu1 }
 0x351   :  { %v1111_v51 = vadd.f32 %v1110_v50, %v1109_v49 }
 0x353   :  { %v911_v53 = vadd.f32 %v1111_v51, %v1006_v52 }
 0x36f   :  { %v980_v54 = vpop.f32.mrb[8].mxu1 }
 0x370   :  { %v981_v55 = vadd.f32 %v980_v54, %v911_v53  ;;  %v1163_v56 = vpop.f32.mrb[9].mxu1 }
 0x372   :  { %1441 = vtanh.f32 %v981_v55 }
 0x37c   :  { %v1442_v57 = vpop.eup %1441 }
 0x37d   :  { %985 = vst [vmem:[#allocation14] sm:$0xff] %v1442_v57 }
 0x37e   :  { %1608 = shalt.err (!%p1605_p4)
}
 0x37f   :  { %s1609_s16 = scalar_lea.hbm %s1824_s7, 128 }
 0x380   :  { %p1610_p5 = scmp.ne.s32.totalorder %s1824_s7, %s1609_s16  ;;  %p1613_p6 = scmp.lt.u32.totalorder %s1609_s16, %s1824_s7 }
 0x382   :  { %p1615_p7 = pnand %p1613_p6, %p1610_p5 }
 0x384   :  { %1618 = shalt.err (!%p1615_p7)
}
 0x385   :  { %995 = dma.vmem_to_hbm [thread:$0]  %s993_s14, 128, %s1824_s7, [#allocation4]  }
 0x386   :  { %1627 = dma.done.wait [#allocation4], 128  }
 0x387   :  { %1628 = vsyncadd [#allocation4], 4294967168 }
 0x388   :  { %999 = vsyncpa [#allocation3], 1 }
 0x389   :  { %1000 = vsyncpa [#allocation6], 1 }
 0x38a   :  { %1001 = vsyncpa [#allocation9], 1 }
 0x38b   :  { %1002 = vsyncpa [#allocation12], 1 }
 0x38c   :  { %1003 = vsyncpa [#allocation4], 1 }

</bundles_post_ra>
